<compile_context>
chip_gen: v6e
topology: v6e:2x2x1
jax: 0.10.0
libtpu: 0.0.40
codegen_flags: <defaults>
</compile_context>

<pallas_src>
from typing import NamedTuple

import jax
import jax.numpy as jnp
from jax.experimental import pallas as pl
from jax.experimental.pallas import tpu as pltpu


def _round_up(x, m):
    return (x + m - 1) // m * m


def _pick_tile(total, preferred):
    """Largest lane-dense tile (multiple of 128) <= preferred dividing `total`."""
    t = min(_round_up(preferred, 128), total)
    t -= t % 128
    while total % t:
        t -= 128
    return t


def _ngram_mlp_kernel(x_ref, w1eff_ref, b1_ref, w2_ref, b2_ref, out_ref, h_ref):
    # x_ref     : (TM, C)        int32  token indices for TM contexts
    # w1eff_ref : (C, VOCp, Hp)  bf16   embedding folded into layer-1 weights
    # b1_ref    : (1, Hp)        f32
    # w2_ref    : (Hp, TN)       bf16
    # b2_ref    : (1, TN)        f32
    # out_ref   : (TM, TN)       f32
    # h_ref     : (TM, Hp)       bf16   scratch; persists across the vocab axis

    # Hidden activations depend only on the batch tile -> compute once per batch
    # tile (first vocab tile j == 0) and reuse across the j axis from scratch.
    @pl.when(pl.program_id(1) == 0)
    def _():
        TM, C = x_ref.shape
        VOCp = w1eff_ref.shape[1]
        lane_ids = jax.lax.broadcasted_iota(jnp.int32, (TM, VOCp), 1)
        acc = None
        for c in range(C):  # C is small & static -> unrolled MXU ops
            # Fused embedding+layer1 gather: one-hot row selection is exact in
            # bf16, so only the (already bf16) weights contribute rounding.
            onehot = (lane_ids == x_ref[:, c:c + 1]).astype(jnp.bfloat16)
            part = jnp.dot(onehot, w1eff_ref[c],
                           preferred_element_type=jnp.float32)
            acc = part if acc is None else acc + part
        # Invariant: padded Hp columns of W1eff and b1 are zero, so tanh(0) = 0
        # keeps the pads exactly zero (and the zero-padded W2 rows keep the
        # output pads zero).  Do not change the activation or pad values
        # without revisiting this.
        h_ref[...] = jnp.tanh(acc + b1_ref[...]).astype(jnp.bfloat16)

    out_ref[...] = (
        jnp.dot(h_ref[...], w2_ref[...], preferred_element_type=jnp.float32)
        + b2_ref[...]
    )


class NGramMLPParams(NamedTuple):
    w1eff: jax.Array    # (C, VOCp, Hp) bf16 -- embedding folded into layer 1
    b1p: jax.Array      # (1, Hp)       f32
    w2p: jax.Array      # (Hp, Vp)      bf16
    b2p: jax.Array      # (1, Vp)       f32
    vocab: int
    context: int
    hidden: int


def prepare_ngram_mlp_params(emb_table, w1, b1, w2, b2):
    """One-time weight preprocessing, hoisted out of the per-call forward path.

    emb_table : (vocab, emb_size) f32
    w1 : (hidden, C*emb_size)  b1 : (hidden,)   (PyTorch (out, in) layout)
    w2 : (vocab, hidden)       b2 : (vocab,)
    """
    VOC, E = emb_table.shape
    H, D = w1.shape
    V = w2.shape[0]
    assert D % E == 0 and w2.shape[1] == H
    C = D // E

    VOCp = _round_up(VOC, 128)
    Hp = _round_up(H, 128)
    Vp = _round_up(V, 128)

    f32 = jnp.float32
    emb32 = emb_table.astype(f32)

    # Fold embedding into layer 1: W1eff[c] = emb_table @ W1[:, c*E:(c+1)*E].T
    w1eff = jnp.zeros((C, VOCp, Hp), f32)
    for c in range(C):
        blk = emb32 @ w1[:, c * E:(c + 1) * E].astype(f32).T   # (VOC, H)
        w1eff = w1eff.at[c, :VOC, :H].set(blk)

    b1p = jnp.zeros((1, Hp), f32).at[0, :H].set(b1.astype(f32))
    w2p = jnp.zeros((Hp, Vp), f32).at[:H, :V].set(w2.T.astype(f32))
    b2p = jnp.zeros((1, Vp), f32).at[0, :V].set(b2.astype(f32))

    return NGramMLPParams(
        w1eff=w1eff.astype(jnp.bfloat16),
        b1p=b1p,
        w2p=w2p.astype(jnp.bfloat16),
        b2p=b2p,
        vocab=V,
        context=C,
        hidden=H,
    )


def ngram_mlp_forward_batched(Xb, params, *, block_m=512, block_n=512):
    """Batched forward: Xb (N, C) int32 -> (N, vocab) f32 logits."""
    N, C = Xb.shape
    assert C == params.context
    _, VOCp, Hp = params.w1eff.shape
    Vp = params.w2p.shape[1]
    V = params.vocab

    # Batch tile: large M amortizes per-grid-step overhead and fills the
    # 256-wide MXU on v6e/v7x (block_m ~256 is enough on v5e's 128-wide MXU).
    TM = block_m if N >= block_m else _round_up(max(N, 1), 16)
    Np = _round_up(N, TM)
    # Vocab/output tile: bounds the output + W2 blocks for large vocab (v7x).
    TN = _pick_tile(Vp, block_n)

    # TODO(synk): out-of-range token indices (>= vocab) silently select a zero
    # row here instead of raising like nn.Embedding.
    Xp = jnp.zeros((Np, C), jnp.int32).at[:N].set(Xb.astype(jnp.int32))

    grid = (Np // TM, Vp // TN)

    # Scoped-VMEM budget: double-buffered blocks + h scratch + headroom,
    # clamped to v7x's 64 MiB physical VMEM.
    blk_bytes = (
        TM * C * 4              # x tile
        + C * VOCp * Hp * 2     # W1eff (bf16)
        + Hp * 4                # b1
        + Hp * TN * 2           # W2 tile (bf16)
        + TN * 4                # b2 tile
        + TM * TN * 4           # out tile
    )
    vmem_limit = int(min(max(2 * blk_bytes + TM * Hp * 2 + (4 << 20), 32 << 20),
                         64 << 20))

    out = pl.pallas_call(
        _ngram_mlp_kernel,
        out_shape=jax.ShapeDtypeStruct((Np, Vp), jnp.float32),
        grid=grid,
        in_specs=[
            pl.BlockSpec((TM, C), lambda i, j: (i, 0)),
            # Grid-invariant operands (fetched once, re-used every step):
            pl.BlockSpec((C, VOCp, Hp), lambda i, j: (0, 0, 0)),
            pl.BlockSpec((1, Hp), lambda i, j: (0, 0)),
            # Vocab-tiled layer-2 weight / bias:
            pl.BlockSpec((Hp, TN), lambda i, j: (0, j)),
            pl.BlockSpec((1, TN), lambda i, j: (0, j)),
        ],
        out_specs=pl.BlockSpec((TM, TN), lambda i, j: (i, j)),
        scratch_shapes=[pltpu.VMEM((TM, Hp), jnp.bfloat16)],
        compiler_params=pltpu.CompilerParams(
            dimension_semantics=("parallel", "arbitrary"),
            vmem_limit_bytes=vmem_limit,
        ),
    )(Xp, params.w1eff, params.b1p, params.w2p, params.b2p)

    return out[:N, :V]


def ngram_mlp_forward(X, params):
    """Single-context forward matching NGramMLPModel.forward: X (C,) -> (vocab,)."""
    return ngram_mlp_forward_batched(X.reshape(1, -1), params)[0]


if __name__ == "__main__":
    # Small shapes consistent with the module's constructor.
    vocab_size = 32
    batch_size = 4          # n-gram context length (number of index inputs)
    embedding_size = 8
    hidden_layer_size = 32
    D = batch_size * embedding_size

    key = jax.random.PRNGKey(0)
    k_emb, k_w1, k_b1, k_w2, k_b2, k_x, k_xb = jax.random.split(key, 7)

    # Init mirroring the module: weights ~ Normal(mean=-1, std=1); biases use
    # PyTorch's default Linear init U(-1/sqrt(fan_in), 1/sqrt(fan_in)).
    emb_table = jax.random.normal(k_emb, (vocab_size, embedding_size), jnp.float32) - 1.0
    w1 = jax.random.normal(k_w1, (hidden_layer_size, D), jnp.float32) - 1.0      # (out, in)
    w2 = jax.random.normal(k_w2, (vocab_size, hidden_layer_size), jnp.float32) - 1.0
    b1 = jax.random.uniform(k_b1, (hidden_layer_size,), jnp.float32,
                            -1.0 / jnp.sqrt(D), 1.0 / jnp.sqrt(D))
    b2 = jax.random.uniform(k_b2, (vocab_size,), jnp.float32,
                            -1.0 / jnp.sqrt(hidden_layer_size),
                            1.0 / jnp.sqrt(hidden_layer_size))

    # One-time weight prep (hoisted out of the forward path).
    params = prepare_ngram_mlp_params(emb_table, w1, b1, w2, b2)

    def ref_f32(Xb):
        emb = emb_table[Xb].reshape(Xb.shape[0], -1)
        return jnp.tanh(emb @ w1.T + b1) @ w2.T + b2

    def ref_matched(Xb):
        # Same arithmetic as the kernel (bf16 operands, f32 accumulation) so the
        # comparison isolates kernel bugs from the intentional bf16 rounding.
        H, V, C = params.hidden, params.vocab, params.context
        acc = None
        for c in range(C):
            rows = params.w1eff[c, Xb[:, c], :H].astype(jnp.float32)
            acc = rows if acc is None else acc + rows
        h = jnp.tanh(acc + params.b1p[:, :H]).astype(jnp.bfloat16).astype(jnp.float32)
        w2f = params.w2p[:H, :V].astype(jnp.float32)
        return jnp.dot(h, w2f, precision=jax.lax.Precision.HIGHEST) + params.b2p[:, :V]

    # --- 1) Single-context forward (exact module semantics: X (C,) -> (vocab,)) ---
    X = jax.random.randint(k_x, (batch_size,), 0, vocab_size, jnp.int32)
    out = jax.block_until_ready(ngram_mlp_forward(X, params))
    assert out.shape == (vocab_size,)
    assert jnp.allclose(out, ref_matched(X.reshape(1, -1))[0], atol=5e-2, rtol=1e-2)
    assert jnp.allclose(out, ref_f32(X.reshape(1, -1))[0], atol=5e-1, rtol=5e-2)

    # --- 2) Batched forward (many contexts at once; exercises the MXU-shaped path) ---
    Nb = 256
    Xb = jax.random.randint(k_xb, (Nb, batch_size), 0, vocab_size, jnp.int32)
    out_b = jax.block_until_ready(ngram_mlp_forward_batched(Xb, params))
    assert out_b.shape == (Nb, vocab_size)
    assert jnp.allclose(out_b, ref_matched(Xb), atol=5e-2, rtol=1e-2)
    assert jnp.allclose(out_b, ref_f32(Xb), atol=5e-1, rtol=5e-2)

    print("KERNEL_OK")
</pallas_src>

<mosaic_0001>
module attributes {stable_mosaic.version = 11 : i64} {
  func.func @_ngram_mlp_kernel(%arg0: i32, %arg1: i32, %arg2: memref<16x4xi32, #tpu.memory_space<vmem>>, %arg3: memref<4x128x128xbf16, #tpu.memory_space<vmem>>, %arg4: memref<1x128xf32, #tpu.memory_space<vmem>>, %arg5: memref<128x128xbf16, #tpu.memory_space<vmem>>, %arg6: memref<1x128xf32, #tpu.memory_space<vmem>>, %arg7: memref<16x128xf32, #tpu.memory_space<vmem>>, %arg8: memref<16x128xbf16, #tpu.memory_space<vmem>>) attributes {dimension_semantics = [#tpu.dimension_semantics<parallel>, #tpu.dimension_semantics<arbitrary>], iteration_bounds = array<i64: 1, 1>, scalar_prefetch = 0 : i64, scratch_operands = 1 : i64, tpu.core_type = #tpu.core_type<tc>, window_params = [{transform_indices = @transform_0, window_bounds = array<i64: 16, 4>}, {pipeline_mode = #tpu.pipeline_mode<synchronous>, transform_indices = @transform_1, window_bounds = array<i64: 4, 128, 128>}, {pipeline_mode = #tpu.pipeline_mode<synchronous>, transform_indices = @transform_2, window_bounds = array<i64: 1, 128>}, {transform_indices = @transform_3, window_bounds = array<i64: 128, 128>}, {transform_indices = @transform_4, window_bounds = array<i64: 1, 128>}, {transform_indices = @transform_5, window_bounds = array<i64: 16, 128>}]} {
    %c0_i32 = arith.constant 0 : i32
    %0 = arith.cmpi eq, %arg1, %c0_i32 : i32
    %1 = arith.extui %0 : i1 to i32
    %c0_i32_0 = arith.constant 0 : i32
    %2 = arith.cmpi ne, %1, %c0_i32_0 : i32
    scf.if %2 {
      %10 = tpu.iota {dimensions = array<i32: 1>} : vector<16x128xi32>
      %c0_8 = arith.constant 0 : index
      %c0_9 = arith.constant 0 : index
      %11 = vector.load %arg2[%c0_8, %c0_9] : memref<16x4xi32, #tpu.memory_space<vmem>>, vector<16x1xi32>
      %12 = vector.broadcast %11 : vector<16x1xi32> to vector<16x128xi32>
      %13 = arith.cmpi eq, %10, %12 : vector<16x128xi32>
      %14 = arith.extui %13 : vector<16x128xi1> to vector<16x128xi32>
      %15 = arith.sitofp %14 : vector<16x128xi32> to vector<16x128xf32>
      %16 = arith.truncf %15 : vector<16x128xf32> to vector<16x128xbf16>
      %c0_10 = arith.constant 0 : index
      %c0_11 = arith.constant 0 : index
      %c0_12 = arith.constant 0 : index
      %17 = vector.load %arg3[%c0_10, %c0_11, %c0_12] : memref<4x128x128xbf16, #tpu.memory_space<vmem>>, vector<1x128x128xbf16>
      %18 = vector.shape_cast %17 : vector<1x128x128xbf16> to vector<128x128xbf16>
      %cst_13 = arith.constant dense<0.000000e+00> : vector<16x128xf32>
      %19 = tpu.matmul %16, %18, %cst_13 {dimension_numbers = #tpu.dot_dimension_numbers<[1], [0], [0], [1], [0, 0, 1, 1], [], []>} : vector<16x128xbf16>, vector<128x128xbf16>, vector<16x128xf32> -> vector<16x128xf32>
      %c0_14 = arith.constant 0 : index
      %c1 = arith.constant 1 : index
      %20 = vector.load %arg2[%c0_14, %c1] : memref<16x4xi32, #tpu.memory_space<vmem>>, vector<16x1xi32>
      %21 = vector.broadcast %20 : vector<16x1xi32> to vector<16x128xi32>
      %22 = arith.cmpi eq, %10, %21 : vector<16x128xi32>
      %23 = arith.extui %22 : vector<16x128xi1> to vector<16x128xi32>
      %24 = arith.sitofp %23 : vector<16x128xi32> to vector<16x128xf32>
      %25 = arith.truncf %24 : vector<16x128xf32> to vector<16x128xbf16>
      %c1_15 = arith.constant 1 : index
      %c0_16 = arith.constant 0 : index
      %c0_17 = arith.constant 0 : index
      %26 = vector.load %arg3[%c1_15, %c0_16, %c0_17] : memref<4x128x128xbf16, #tpu.memory_space<vmem>>, vector<1x128x128xbf16>
      %27 = vector.shape_cast %26 : vector<1x128x128xbf16> to vector<128x128xbf16>
      %cst_18 = arith.constant dense<0.000000e+00> : vector<16x128xf32>
      %28 = tpu.matmul %25, %27, %cst_18 {dimension_numbers = #tpu.dot_dimension_numbers<[1], [0], [0], [1], [0, 0, 1, 1], [], []>} : vector<16x128xbf16>, vector<128x128xbf16>, vector<16x128xf32> -> vector<16x128xf32>
      %29 = arith.addf %19, %28 : vector<16x128xf32>
      %c0_19 = arith.constant 0 : index
      %c2 = arith.constant 2 : index
      %30 = vector.load %arg2[%c0_19, %c2] : memref<16x4xi32, #tpu.memory_space<vmem>>, vector<16x1xi32>
      %31 = vector.broadcast %30 : vector<16x1xi32> to vector<16x128xi32>
      %32 = arith.cmpi eq, %10, %31 : vector<16x128xi32>
      %33 = arith.extui %32 : vector<16x128xi1> to vector<16x128xi32>
      %34 = arith.sitofp %33 : vector<16x128xi32> to vector<16x128xf32>
      %35 = arith.truncf %34 : vector<16x128xf32> to vector<16x128xbf16>
      %c2_20 = arith.constant 2 : index
      %c0_21 = arith.constant 0 : index
      %c0_22 = arith.constant 0 : index
      %36 = vector.load %arg3[%c2_20, %c0_21, %c0_22] : memref<4x128x128xbf16, #tpu.memory_space<vmem>>, vector<1x128x128xbf16>
      %37 = vector.shape_cast %36 : vector<1x128x128xbf16> to vector<128x128xbf16>
      %cst_23 = arith.constant dense<0.000000e+00> : vector<16x128xf32>
      %38 = tpu.matmul %35, %37, %cst_23 {dimension_numbers = #tpu.dot_dimension_numbers<[1], [0], [0], [1], [0, 0, 1, 1], [], []>} : vector<16x128xbf16>, vector<128x128xbf16>, vector<16x128xf32> -> vector<16x128xf32>
      %39 = arith.addf %29, %38 : vector<16x128xf32>
      %c0_24 = arith.constant 0 : index
      %c3 = arith.constant 3 : index
      %40 = vector.load %arg2[%c0_24, %c3] : memref<16x4xi32, #tpu.memory_space<vmem>>, vector<16x1xi32>
      %41 = vector.broadcast %40 : vector<16x1xi32> to vector<16x128xi32>
      %42 = arith.cmpi eq, %10, %41 : vector<16x128xi32>
      %43 = arith.extui %42 : vector<16x128xi1> to vector<16x128xi32>
      %44 = arith.sitofp %43 : vector<16x128xi32> to vector<16x128xf32>
      %45 = arith.truncf %44 : vector<16x128xf32> to vector<16x128xbf16>
      %c3_25 = arith.constant 3 : index
      %c0_26 = arith.constant 0 : index
      %c0_27 = arith.constant 0 : index
      %46 = vector.load %arg3[%c3_25, %c0_26, %c0_27] : memref<4x128x128xbf16, #tpu.memory_space<vmem>>, vector<1x128x128xbf16>
      %47 = vector.shape_cast %46 : vector<1x128x128xbf16> to vector<128x128xbf16>
      %cst_28 = arith.constant dense<0.000000e+00> : vector<16x128xf32>
      %48 = tpu.matmul %45, %47, %cst_28 {dimension_numbers = #tpu.dot_dimension_numbers<[1], [0], [0], [1], [0, 0, 1, 1], [], []>} : vector<16x128xbf16>, vector<128x128xbf16>, vector<16x128xf32> -> vector<16x128xf32>
      %49 = arith.addf %39, %48 : vector<16x128xf32>
      %c0_29 = arith.constant 0 : index
      %c0_30 = arith.constant 0 : index
      %50 = vector.load %arg4[%c0_29, %c0_30] : memref<1x128xf32, #tpu.memory_space<vmem>>, vector<1x128xf32>
      %51 = vector.broadcast %50 : vector<1x128xf32> to vector<16x128xf32>
      %52 = arith.addf %49, %51 : vector<16x128xf32>
      %53 = math.tanh %52 : vector<16x128xf32>
      %54 = arith.truncf %53 : vector<16x128xf32> to vector<16x128xbf16>
      %c0_31 = arith.constant 0 : index
      %c0_32 = arith.constant 0 : index
      %55 = vector.load %arg8[%c0_31, %c0_32] : memref<16x128xbf16, #tpu.memory_space<vmem>>, vector<16x128xbf16>
      tpu.vector_store %arg8[%c0_31, %c0_32], %54 {strides = array<i32>} : memref<16x128xbf16, #tpu.memory_space<vmem>>, vector<16x128xbf16>,
    } else {
    }
    %c0 = arith.constant 0 : index
    %c0_1 = arith.constant 0 : index
    %3 = vector.load %arg8[%c0, %c0_1] : memref<16x128xbf16, #tpu.memory_space<vmem>>, vector<16x128xbf16>
    %c0_2 = arith.constant 0 : index
    %c0_3 = arith.constant 0 : index
    %4 = vector.load %arg5[%c0_2, %c0_3] : memref<128x128xbf16, #tpu.memory_space<vmem>>, vector<128x128xbf16>
    %cst = arith.constant dense<0.000000e+00> : vector<16x128xf32>
    %5 = tpu.matmul %3, %4, %cst {dimension_numbers = #tpu.dot_dimension_numbers<[1], [0], [0], [1], [0, 0, 1, 1], [], []>} : vector<16x128xbf16>, vector<128x128xbf16>, vector<16x128xf32> -> vector<16x128xf32>
    %c0_4 = arith.constant 0 : index
    %c0_5 = arith.constant 0 : index
    %6 = vector.load %arg6[%c0_4, %c0_5] : memref<1x128xf32, #tpu.memory_space<vmem>>, vector<1x128xf32>
    %7 = vector.broadcast %6 : vector<1x128xf32> to vector<16x128xf32>
    %8 = arith.addf %5, %7 : vector<16x128xf32>
    %c0_6 = arith.constant 0 : index
    %c0_7 = arith.constant 0 : index
    %9 = vector.load %arg7[%c0_6, %c0_7] : memref<16x128xf32, #tpu.memory_space<vmem>>, vector<16x128xf32>
    tpu.vector_store %arg7[%c0_6, %c0_7], %8 {strides = array<i32>} : memref<16x128xf32, #tpu.memory_space<vmem>>, vector<16x128xf32>,
    return
  }
  func.func @transform_0(%arg0: i32, %arg1: i32) -> (i32, i32) {
    %c0_i32 = arith.constant 0 : i32
    %c0_i32_0 = arith.constant 0 : i32
    return %arg0, %c0_i32 : i32, i32
  }
  func.func @transform_1(%arg0: i32, %arg1: i32) -> (i32, i32, i32) {
    %c0_i32 = arith.constant 0 : i32
    %c0_i32_0 = arith.constant 0 : i32
    %c0_i32_1 = arith.constant 0 : i32
    %c0_i32_2 = arith.constant 0 : i32
    return %c0_i32, %c0_i32_0, %c0_i32_1 : i32, i32, i32
  }
  func.func @transform_2(%arg0: i32, %arg1: i32) -> (i32, i32) {
    %c0_i32 = arith.constant 0 : i32
    %c0_i32_0 = arith.constant 0 : i32
    %c0_i32_1 = arith.constant 0 : i32
    return %c0_i32, %c0_i32_0 : i32, i32
  }
  func.func @transform_3(%arg0: i32, %arg1: i32) -> (i32, i32) {
    %c0_i32 = arith.constant 0 : i32
    %c0_i32_0 = arith.constant 0 : i32
    return %c0_i32, %arg1 : i32, i32
  }
  func.func @transform_4(%arg0: i32, %arg1: i32) -> (i32, i32) {
    %c0_i32 = arith.constant 0 : i32
    %c0_i32_0 = arith.constant 0 : i32
    return %c0_i32, %arg1 : i32, i32
  }
  func.func @transform_5(%arg0: i32, %arg1: i32) -> (i32, i32) {
    %c0_i32 = arith.constant 0 : i32
    return %arg0, %arg1 : i32, i32
  }
}

</mosaic_0001>

<bundles_post_ra>
// kernel: tpu_custom_call.1
= control target key start
LH: loop header
LB: loop body
LE: loop exit
PB: predicated region body
PF: predicated region fallthrough
CT: control target
= control target key end

     0   :  { %10 = vsyncpa [#allocation4], 0  ;;  %s1167_s0 = inlined_call_operand.vmem [shape: s32[16,4], index: 0, kind: input, shape index: {}]   ;;  %s1168_s1 = inlined_call_operand.hbm [shape: bf16[4,128,128], index: 1, kind: input, shape index: {}]   ;;  %s1169_s2 = inlined_call_operand.vmem [shape: f32[1,128], index: 2, kind: input, shape index: {}]   ;;  %s1170_s3 = inlined_call_operand.hbm [shape: bf16[128,128], index: 3, kind: input, shape index: {}]   ;;  %s1171_s4 = inlined_call_operand.vmem [shape: f32[1,128], index: 4, kind: input, shape index: {}]   ;;  %s1172_s5 = inlined_call_operand.hbm [shape: f32[16,128], index: 5, kind: output, shape index: {}]  }
   0x1   :  { %11 = vsyncpa [#allocation7], 0 }
   0x2   :  { %12 = vsyncpa [#allocation5], 0  ;;  %s1042_s18 = smov [#allocation3]  }
   0x3   :  { %s20_s19 = sshll.u32 %s1042_s18, 4  ;;  %s21_s19 = int_to_ptr.vmem [resolvable:$true] %s20_s19 }
   0x4   :  { %s984_s20 = scalar_lea.vmem %s21_s19, 4096  ;;  %p989_p1 = scmp.lt.s32.totalorder %s21_s19, %s21_s19 }
   0x5   :  { %p985_p0 = scmp.ne.s32.totalorder %s21_s19, %s984_s20  ;;  %p990_p2 = scmp.lt.s32.totalorder %s984_s20, %s984_s20 }
   0x7   :  { %p991_p3 = por %p990_p2, %p989_p1 }
   0x9   :  { %p992_p4 = pnand %p991_p3, %p985_p0 }
   0xb   :  { %995 = shalt.err (!%p992_p4)
}
   0xc   :  { %s1043_s21 = smov 64   ;;  %s1044_s22 = smov 4  }
   0xd   :  { %26 = dma.hbm_to_vmem [thread:$0]  %s1168_s1, 4096, %s21_s19, [#allocation4], %s1043_s21, %s1043_s21, %s1044_s22  }
   0xe   :  { %s1045_s25 = smov [#allocation6]  }
   0xf   :  { %s34_s26 = sshll.u32 %s1045_s25, 4  ;;  %s35_s26 = int_to_ptr.vmem [resolvable:$true] %s34_s26 }
  0x10   :  { %s1004_s27 = scalar_lea.vmem %s35_s26, 1024  ;;  %p1009_p6 = scmp.lt.s32.totalorder %s35_s26, %s35_s26 }
  0x11   :  { %p1005_p5 = scmp.ne.s32.totalorder %s35_s26, %s1004_s27  ;;  %p1010_p7 = scmp.lt.s32.totalorder %s1004_s27, %s1004_s27 }
  0x13   :  { %p1011_p8 = por %p1010_p7, %p1009_p6 }
  0x15   :  { %p1012_p9 = pnand %p1011_p8, %p1005_p5 }
  0x17   :  { %1015 = shalt.err (!%p1012_p9)
}
  0x18   :  { %40 = dma.hbm_to_vmem [thread:$0]  %s1170_s3, 1024, %s35_s26, [#allocation7], %s1043_s21, %s1043_s21, %s1044_s22  }
  0x19   :  { %1036 = dma.done.wait [#allocation4], 4096  }
  0x1a   :  { %1037 = vsyncadd [#allocation4], 4294963200 }
  0x1b   :  { %1038 = dma.done.wait [#allocation7], 1024  }
  0x1c   :  { %1039 = vsyncadd [#allocation7], 4294966272  ;;  %v1046_v0 = vmov 1   ;;  %v1047_v1 = vmov 0   ;;  %v1048_v2 = vmov 0.0   ;;  %v56_v3 = vld [vmem:[%s1167_s0] sm:$0xff]  ;;  %v54_v23 = vlaneseq }
  0x1d   :  { %925 = vset.pattern.permute.xlu0 %v1046_v0  ;;  %926 = vset.pattern.permute.xlu1 %v1047_v1  ;;  %v57_v4 = vld [vmem:[%s1167_s0 + $0x8] sm:$0xff]  ;;  %v931_v5 = vld [vmem:[#allocation3 + $0x78] sm:$0xff]   ;;  %v933_v7 = vld [vmem:[#allocation3 + $0x70] sm:$0xff]   ;;  %vm1049_vm0 = vmmov 0   ;;  %v1050_v11 = vmov 2   ;;  %v1051_v14 = vmov 3  }
  0x1e   :  { %811 = vmatprep.subr.bf16.mxu0 %v1048_v2  ;;  %831 = vmatprep.subr.bf16.mxu1 %v1048_v2  ;;  %v932_v6 = vld [vmem:[#allocation3 + $0x38] sm:$0xff]   ;;  %v934_v8 = vld [vmem:[#allocation3 + $0x30] sm:$0xff]   ;;  %v935_v9 = vld [vmem:[#allocation3 + $0x68] sm:$0xff]   ;;  %v1120_v26 = vand.u32 127, %v54_v23  ;;  %v1052_v31 = vmov 1.0|1.0  }
  0x1f   :  { %59 = vperm.xlu1 %926, %v56_v3   ;;  %88 = vperm.xlu0 %925, %v56_v3   ;;  %v936_v10 = vld [vmem:[#allocation3 + $0x28] sm:$0xff]   ;;  %v937_v12 = vld [vmem:[#allocation3 + $0x60] sm:$0xff]   ;;  %v939_v15 = vld [vmem:[#allocation3 + $0x58] sm:$0xff]  }
  0x20   :  { %812 = vmatpush3.bf16.msra.mxu0 %v931_v5  ;;  %827 = vmatprep.mubr.msk.bf16.mxu0 %vm1049_vm0, %v1048_v2  ;;  %v938_v13 = vld [vmem:[#allocation3 + $0x20] sm:$0xff]   ;;  %v940_v16 = vld [vmem:[#allocation3 + $0x18] sm:$0xff]   ;;  %v941_v17 = vld [vmem:[#allocation3 + $0x50] sm:$0xff]  }
  0x21   :  { %832 = vmatpush3.bf16.msra.mxu1 %v932_v6  ;;  %813 = vmatprep.subr.bf16.mxu0 %v1048_v2  ;;  %v942_v18 = vld [vmem:[#allocation3 + $0x10] sm:$0xff]   ;;  %v943_v19 = vld [vmem:[#allocation3 + $0x48] sm:$0xff]   ;;  %v945_v21 = vld [vmem:[#allocation3 + $0x40] sm:$0xff]  }
  0x22   :  { %833 = vmatprep.subr.bf16.mxu1 %v1048_v2  ;;  %847 = vmatprep.mubr.msk.bf16.mxu1 %vm1049_vm0, %v1048_v2  ;;  %v944_v20 = vld [vmem:[#allocation3 + $0x8] sm:$0xff]   ;;  %v946_v22 = vld [vmem:[#allocation3] sm:$0xff]   ;;  %v948_v29 = vld [vmem:[#allocation3 + $0xf8] sm:$0xff]  }
  0x23   :  { %62 = vperm.xlu1 %926, %v57_v4   ;;  %91 = vperm.xlu0 %925, %v57_v4   ;;  %v947_v30 = vld [vmem:[#allocation3 + $0xb8] sm:$0xff]   ;;  %v950_v32 = vld [vmem:[#allocation3 + $0xf0] sm:$0xff]   ;;  %v952_v34 = vld [vmem:[#allocation3 + $0xe8] sm:$0xff]  }
  0x24   :  { %814 = vmatpush3.bf16.msra.mxu0 %v933_v7  ;;  %v949_v33 = vld [vmem:[#allocation3 + $0xb0] sm:$0xff]   ;;  %v951_v35 = vld [vmem:[#allocation3 + $0xa8] sm:$0xff]   ;;  %v954_v36 = vld [vmem:[#allocation3 + $0xe0] sm:$0xff]  }
  0x25   :  { %834 = vmatpush3.bf16.msra.mxu1 %v934_v8  ;;  %815 = vmatprep.subr.bf16.mxu0 %v1048_v2  ;;  %v953_v37 = vld [vmem:[#allocation3 + $0xa0] sm:$0xff]   ;;  %v956_v38 = vld [vmem:[#allocation3 + $0xd8] sm:$0xff]   ;;  %v958_v40 = vld [vmem:[#allocation3 + $0xd0] sm:$0xff]  }
  0x26   :  { %835 = vmatprep.subr.bf16.mxu1 %v1048_v2  ;;  %v955_v39 = vld [vmem:[#allocation3 + $0x98] sm:$0xff]   ;;  %v957_v43 = vld [vmem:[#allocation3 + $0x90] sm:$0xff]   ;;  %v959_v44 = vld [vmem:[#allocation3 + $0xc8] sm:$0xff]  }
  0x27   :  { %928 = vset.pattern.permute.xlu1 %v1050_v11  ;;  %927 = vset.pattern.permute.xlu0 %v1050_v11  ;;  %v960_v45 = vld [vmem:[#allocation3 + $0x88] sm:$0xff]   ;;  %v961_v48 = vld [vmem:[#allocation3 + $0xc0] sm:$0xff]   ;;  %v963_v50 = vld [vmem:[#allocation6 + $0x38] sm:$0xff]  }
  0x28   :  { %299 = vperm.xlu1 %928, %v57_v4   ;;  %296 = vperm.xlu0 %927, %v56_v3   ;;  %v962_v49 = vld [vmem:[#allocation3 + $0x80] sm:$0xff]   ;;  %v964_v51 = vld [vmem:[#allocation6 + $0x30] sm:$0xff]   ;;  %v965_v52 = vld [vmem:[#allocation6 + $0x28] sm:$0xff]  }
  0x29   :  { %816 = vmatpush3.bf16.msra.mxu0 %v935_v9  ;;  %836 = vmatpush3.bf16.msra.mxu1 %v936_v10  ;;  %v966_v53 = vld [vmem:[#allocation6 + $0x20] sm:$0xff]   ;;  %v967_v54 = vld [vmem:[#allocation6 + $0x18] sm:$0xff]   ;;  %v968_v55 = vld [vmem:[#allocation6 + $0x10] sm:$0xff]  }
  0x2a   :  { %817 = vmatprep.subr.bf16.mxu0 %v1048_v2  ;;  %837 = vmatprep.subr.bf16.mxu1 %v1048_v2  ;;  %v969_v56 = vld [vmem:[#allocation6 + $0x8] sm:$0xff]   ;;  %v970_v57 = vld [vmem:[#allocation6] sm:$0xff]   ;;  %v749_v23 = vld [vmem:[%s1171_s4] ss:$0 sm:$0xff] }
  0x2c   :  { %929 = vset.pattern.permute.xlu1 %v1051_v14  ;;  %930 = vset.pattern.permute.xlu0 %v1051_v14 }
  0x2d   :  { %417 = vperm.xlu1 %929, %v56_v3   ;;  %420 = vperm.xlu0 %930, %v57_v4  }
  0x2e   :  { %818 = vmatpush3.bf16.msra.mxu0 %v937_v12  ;;  %838 = vmatpush3.bf16.msra.mxu1 %v938_v13 }
  0x2f   :  { %819 = vmatprep.subr.bf16.mxu0 %v1048_v2  ;;  %839 = vmatprep.subr.bf16.mxu1 %v1048_v2 }
  0x32   :  { %820 = vmatpush3.bf16.msra.mxu0 %v939_v15  ;;  %840 = vmatpush3.bf16.msra.mxu1 %v940_v16 }
  0x33   :  { %821 = vmatprep.subr.bf16.mxu0 %v1048_v2  ;;  %841 = vmatprep.subr.bf16.mxu1 %v1048_v2 }
  0x36   :  { %822 = vmatpush3.bf16.msra.mxu0 %v941_v17  ;;  %842 = vmatpush3.bf16.msra.mxu1 %v942_v18 }
  0x37   :  { %823 = vmatprep.subr.bf16.mxu0 %v1048_v2  ;;  %843 = vmatprep.subr.bf16.mxu1 %v1048_v2 }
  0x3a   :  { %824 = vmatpush3.bf16.msra.mxu0 %v943_v19  ;;  %844 = vmatpush3.bf16.msra.mxu1 %v944_v20 }
  0x3b   :  { %825 = vmatprep.subr.bf16.mxu0 %v1048_v2  ;;  %845 = vmatprep.subr.bf16.mxu1 %v1048_v2 }
  0x3e   :  { %826 = vmatpush3.bf16.msra.mxu0 %v945_v21  ;;  %846 = vmatpush3.bf16.msra.mxu1 %v946_v22 }
  0x3f   :  { %851 = vmatprep.subr.bf16.mxu0 %v1048_v2  ;;  %871 = vmatprep.subr.bf16.mxu1 %v1048_v2 }
  0x9a   :  { %v60_v24 = vpop.permute.xlu1 %59  ;;  %v89_v25 = vpop.permute.xlu0 %88 }
  0x9b   :  { %vm64_vm1 = vcmp.eq.s32.totalorder %v1120_v26, %v60_v24  ;;  %vm93_vm4 = vcmp.eq.s32.totalorder %v1120_v26, %v89_v25 }
  0x9e   :  { %v63_v27 = vpop.permute.xlu1 %62  ;;  %v92_v28 = vpop.permute.xlu0 %91 }
  0x9f   :  { %vm65_vm2 = vcmp.eq.s32.totalorder %v1120_v26, %v63_v27  ;;  %vm94_vm3 = vcmp.eq.s32.totalorder %v1120_v26, %v92_v28 }
  0xa0   :  { %vm720_vm5 = vmpackc.low %vm65_vm2, %vm64_vm1 }
  0xa1   :  { %vm710_vm6 = vmpackc.low %vm94_vm3, %vm93_vm4  ;;  %848 = vmatmul.mubr.msk.bf16.vlgmr.msra.gmra.mxu1 %vm720_vm5, %v1052_v31 }
  0xa2   :  { %828 = vmatmul.mubr.msk.bf16.vlgmr.msra.gmra.mxu0 %vm710_vm6, %v1052_v31  ;;  %872 = vmatpush3.bf16.msra.mxu1 %v948_v29 }
  0xa3   :  { %852 = vmatpush3.bf16.msra.mxu0 %v947_v30  ;;  %873 = vmatprep.subr.bf16.mxu1 %v1048_v2  ;;  %v300_v41 = vpop.permute.xlu1 %299  ;;  %v297_v42 = vpop.permute.xlu0 %296 }
  0xa4   :  { %853 = vmatprep.subr.bf16.mxu0 %v1048_v2  ;;  %867 = vmatprep.mubr.msk.bf16.mxu0 %vm1049_vm0, %v1048_v2  ;;  %vm302_vm9 = vcmp.eq.s32.totalorder %v1120_v26, %v300_v41  ;;  %vm301_vm10 = vcmp.eq.s32.totalorder %v1120_v26, %v297_v42 }
  0xa5   :  { %887 = vmatprep.mubr.msk.bf16.mxu1 %vm1049_vm0, %v1048_v2  ;;  %vm732_vm12 = vmpackc.low %vm302_vm9, %vm301_vm10 }
  0xa6   :  { %874 = vmatpush3.bf16.msra.mxu1 %v950_v32 }
  0xa7   :  { %854 = vmatpush3.bf16.msra.mxu0 %v949_v33  ;;  %875 = vmatprep.subr.bf16.mxu1 %v1048_v2 }
  0xa8   :  { %855 = vmatprep.subr.bf16.mxu0 %v1048_v2  ;;  %v418_v46 = vpop.permute.xlu1 %417  ;;  %v421_v47 = vpop.permute.xlu0 %420 }
  0xa9   :  { %vm422_vm7 = vcmp.eq.s32.totalorder %v1120_v26, %v418_v46  ;;  %vm423_vm8 = vcmp.eq.s32.totalorder %v1120_v26, %v421_v47 }
  0xaa   :  { %876 = vmatpush3.bf16.msra.mxu1 %v952_v34  ;;  %vm744_vm11 = vmpackc.low %vm423_vm8, %vm422_vm7 }
  0xab   :  { %856 = vmatpush3.bf16.msra.mxu0 %v951_v35  ;;  %877 = vmatprep.subr.bf16.mxu1 %v1048_v2 }
  0xac   :  { %857 = vmatprep.subr.bf16.mxu0 %v1048_v2 }
  0xae   :  { %878 = vmatpush3.bf16.msra.mxu1 %v954_v36 }
  0xaf   :  { %858 = vmatpush3.bf16.msra.mxu0 %v953_v37  ;;  %879 = vmatprep.subr.bf16.mxu1 %v1048_v2 }
  0xb0   :  { %859 = vmatprep.subr.bf16.mxu0 %v1048_v2 }
  0xb2   :  { %880 = vmatpush3.bf16.msra.mxu1 %v956_v38 }
  0xb3   :  { %860 = vmatpush3.bf16.msra.mxu0 %v955_v39  ;;  %881 = vmatprep.subr.bf16.mxu1 %v1048_v2 }
  0xb4   :  { %861 = vmatprep.subr.bf16.mxu0 %v1048_v2 }
  0xb6   :  { %882 = vmatpush3.bf16.msra.mxu1 %v958_v40 }
  0xb7   :  { %862 = vmatpush3.bf16.msra.mxu0 %v957_v43  ;;  %883 = vmatprep.subr.bf16.mxu1 %v1048_v2 }
  0xb8   :  { %863 = vmatprep.subr.bf16.mxu0 %v1048_v2 }
  0xba   :  { %884 = vmatpush3.bf16.msra.mxu1 %v959_v44 }
  0xbb   :  { %864 = vmatpush3.bf16.msra.mxu0 %v960_v45  ;;  %885 = vmatprep.subr.bf16.mxu1 %v1048_v2 }
  0xbc   :  { %865 = vmatprep.subr.bf16.mxu0 %v1048_v2 }
  0xbe   :  { %886 = vmatpush3.bf16.msra.mxu1 %v961_v48 }
  0xbf   :  { %866 = vmatpush3.bf16.msra.mxu0 %v962_v49 }
  0xc0   :  { %891 = vmatprep.subr.bf16.mxu0 %v1048_v2 }
  0xc1   :  { %888 = vmatmul.mubr.msk.bf16.vlgmr.msra.gmra.mxu1 %vm744_vm11, %v1052_v31 }
  0xc2   :  { %868 = vmatmul.mubr.msk.bf16.vlgmr.msra.gmra.mxu0 %vm732_vm12, %v1052_v31 }
  0xc3   :  { %907 = vmatprep.mubr.msk.bf16.mxu0 %vm1049_vm0, %v1048_v2  ;;  %892 = vmatpush3.bf16.msra.mxu0 %v963_v50 }
  0xc4   :  { %893 = vmatprep.subr.bf16.mxu0 %v1048_v2 }
  0xc7   :  { %894 = vmatpush3.bf16.msra.mxu0 %v964_v51 }
  0xc8   :  { %895 = vmatprep.subr.bf16.mxu0 %v1048_v2 }
  0xcb   :  { %896 = vmatpush3.bf16.msra.mxu0 %v965_v52 }
  0xcc   :  { %897 = vmatprep.subr.bf16.mxu0 %v1048_v2 }
  0xcf   :  { %898 = vmatpush3.bf16.msra.mxu0 %v966_v53 }
  0xd0   :  { %899 = vmatprep.subr.bf16.mxu0 %v1048_v2 }
  0xd3   :  { %900 = vmatpush3.bf16.msra.mxu0 %v967_v54 }
  0xd4   :  { %901 = vmatprep.subr.bf16.mxu0 %v1048_v2 }
  0xd7   :  { %902 = vmatpush3.bf16.msra.mxu0 %v968_v55 }
  0xd8   :  { %903 = vmatprep.subr.bf16.mxu0 %v1048_v2 }
  0xdb   :  { %904 = vmatpush3.bf16.msra.mxu0 %v969_v56 }
  0xdc   :  { %905 = vmatprep.subr.bf16.mxu0 %v1048_v2  ;;  %v746_v2 = vld [vmem:[%s1169_s2] ss:$0 sm:$0xff]  ;;  %s1053_s2 = smov [#allocation8]  }
  0xdd   :  { %s685_s10 = sshll.u32 %s1053_s2, 4  ;;  %s686_s10 = int_to_ptr.vmem [resolvable:$true] %s685_s10 }
  0xde   :  { %s1016_s11 = scalar_lea.vmem %s686_s10, 256  ;;  %p1021_p11 = scmp.lt.s32.totalorder %s686_s10, %s686_s10 }
  0xdf   :  { %906 = vmatpush3.bf16.msra.mxu0 %v970_v57  ;;  %p1017_p10 = scmp.ne.s32.totalorder %s686_s10, %s1016_s11  ;;  %p1022_p12 = scmp.lt.s32.totalorder %s1016_s11, %s1016_s11 }
  0xe1   :  { %p1023_p13 = por %p1022_p12, %p1021_p11 }
  0xe3   :  { %p1024_p0 = pnand %p1023_p13, %p1017_p10 }
 0x161   :  { %v288_v58 = vpop.f32.mrf.mxu1 }
 0x162   :  { %v199_v59 = vpop.f32.mrf.mxu0 }
 0x163   :  { %v849_v60 = vpop.f32.mrf.mxu1  ;;  %v289_v3 = vadd.f32 %v288_v58, %v199_v59 }
 0x164   :  { %v829_v61 = vpop.f32.mrf.mxu0 }
 0x165   :  { %v291_v62 = vpop.f32.mrf.mxu1 }
 0x166   :  { %v202_v63 = vpop.f32.mrf.mxu0 }
 0x167   :  { %v850_v0 = vpop.f32.mrf.mxu1  ;;  %v292_v9 = vadd.f32 %v291_v62, %v202_v63 }
 0x168   :  { %v830_v1 = vpop.f32.mrf.mxu0 }
 0x181   :  { %v528_v4 = vpop.f32.mrf.mxu1 }
 0x182   :  { %v407_v5 = vpop.f32.mrf.mxu0 }
 0x183   :  { %v414_v6 = vadd.f32 %v407_v5, %v289_v3  ;;  %v889_v7 = vpop.f32.mrf.mxu1 }
 0x184   :  { %v869_v8 = vpop.f32.mrf.mxu0 }
 0x185   :  { %v535_v10 = vadd.f32 %v528_v4, %v414_v6  ;;  %v531_v11 = vpop.f32.mrf.mxu1 }
 0x186   :  { %v410_v12 = vpop.f32.mrf.mxu0 }
 0x187   :  { %v415_v13 = vadd.f32 %v410_v12, %v292_v9  ;;  %v890_v14 = vpop.f32.mrf.mxu1  ;;  %v544_v15 = vadd.f32 %v746_v2, %v535_v10 }
 0x188   :  { %v870_v16 = vpop.f32.mrf.mxu0 }
 0x189   :  { %v536_v17 = vadd.f32 %v531_v11, %v415_v13  ;;  %972 = vtanh.f32 %v544_v15 }
 0x18b   :  { %v545_v18 = vadd.f32 %v746_v2, %v536_v17 }
 0x18d   :  { %974 = vtanh.f32 %v545_v18 }
 0x196   :  { %v973_v19 = vpop.eup %972 }
 0x19a   :  { %v975_v20 = vpop.eup %974 }
 0x19b   :  { %v764_v21 = vpack.c.bf16 %v975_v20, %v973_v19 }
 0x19d   :  { %765 = vst [vmem:[#allocation2] sm:$0xff] %v764_v21  }
 0x1a4   :  { %v971_v22 = vld [vmem:[#allocation2] sm:$0xff]  }
 0x1a5   :  { %908 = vmatmul.mubr.bf16.vlgmr.msra.gmra.mxu0 %v971_v22 }
 0x265   :  { %v671_v24 = vpop.f32.mrf.mxu0 }
 0x266   :  { %v672_v25 = vadd.f32 %v749_v23, %v671_v24 }
 0x267   :  { %v909_v26 = vpop.f32.mrf.mxu0 }
 0x268   :  { %678 = vst [vmem:[#allocation8] sm:$0xff] %v672_v25 }
 0x269   :  { %v674_v27 = vpop.f32.mrf.mxu0 }
 0x26a   :  { %v675_v28 = vadd.f32 %v749_v23, %v674_v27 }
 0x26b   :  { %v910_v29 = vpop.f32.mrf.mxu0 }
 0x26c   :  { %679 = vst [vmem:[#allocation8 + $0x8] sm:$0xff] %v675_v28 }
 0x26d   :  { %1027 = shalt.err (!%p1024_p0)
}
 0x26e   :  { %s1054_s12 = smov 128   ;;  %s1055_s4 = smov 8  }
 0x26f   :  { %691 = dma.vmem_to_hbm [thread:$0]  %s686_s10, 256, %s1172_s5, [#allocation5], %s1054_s12, %s1054_s12, %s1055_s4  }
 0x270   :  { %1040 = dma.done.wait [#allocation5], 256  }
 0x271   :  { %1041 = vsyncadd [#allocation5], 4294967040 }
 0x272   :  { %695 = vsyncpa [#allocation4], 1 }
 0x273   :  { %696 = vsyncpa [#allocation7], 1 }
 0x274   :  { %697 = vsyncpa [#allocation5], 1 }

</bundles_post_ra>
